<compile_context>
chip_gen: v7x
topology: tpu7x:2x2x1
jax: 0.10.0
libtpu: 0.0.40
codegen_flags: <defaults>
</compile_context>

<pallas_src>
import jax
import jax.numpy as jnp
from jax.experimental import pallas as pl
from jax.experimental.pallas import tpu as pltpu

# ---------------- model hyper-params ----------------
N_FEAT = 32        # num_features_in_feat == num_features_out
N_COND = 8         # num_features_in_cond
BN_EPS = 1e-5

BATCH = 16         # per-invocation batch of the original module
N_STACK = 16       # stacked invocations fused behind one pallas_call
LANES = 128
PACK = LANES // N_FEAT        # 4 original rows per lane-dense vreg row
TILE_P = 16                   # packed rows per grid step (= 64 original rows)


def cbn_kernel(xp_ref, cp_ref, w_ref, b_ref, o_ref):
    # One bf16 MXU dot produces [gamma | beta] for 4 packed batch rows per
    # sublane, already in the lane-dense output layout (block-diag weights).
    r = jnp.dot(cp_ref[...], w_ref[...], preferred_element_type=jnp.float32)
    r = r + b_ref[...]                       # (TILE_P, 256) + (1, 256)
    gamma = r[:, :LANES]                     # lane slice at vreg boundary
    beta = r[:, LANES:]
    o_ref[...] = (gamma * xp_ref[...] + beta).astype(o_ref.dtype)


def conditional_batch_norm(x, cond, w_cat, b_cat):
    N, F = x.shape
    assert F == N_FEAT and N % (PACK * TILE_P) == 0
    n_packed = N // PACK

    # pure layout plumbing: lane-dense (.., 128) views; bf16 cond for the MXU
    x_packed = x.reshape(n_packed, PACK * F)
    cond_packed = cond.reshape(n_packed, PACK * N_COND).astype(jnp.bfloat16)

    grid = (n_packed // TILE_P,)
    flops = 2 * n_packed * (PACK * N_COND) * (2 * LANES) + 3 * N * F
    bytes_accessed = (x_packed.size * 4 + cond_packed.size * 2
                      + w_cat.size * 2 + b_cat.size * 4 + N * F * 4)

    out_packed = pl.pallas_call(
        cbn_kernel,
        out_shape=jax.ShapeDtypeStruct((n_packed, PACK * F), x.dtype),
        grid_spec=pltpu.PrefetchScalarGridSpec(
            num_scalar_prefetch=0,
            grid=grid,
            in_specs=[
                pl.BlockSpec((TILE_P, PACK * F), lambda i: (i, 0)),
                pl.BlockSpec((TILE_P, PACK * N_COND), lambda i: (i, 0)),
                pl.BlockSpec((PACK * N_COND, 2 * LANES), lambda i: (0, 0)),
                pl.BlockSpec((1, 2 * LANES), lambda i: (0, 0)),
            ],
            out_specs=pl.BlockSpec((TILE_P, PACK * F), lambda i: (i, 0)),
        ),
        compiler_params=pltpu.CompilerParams(
            dimension_semantics=("parallel",)),
        cost_estimate=pl.CostEstimate(
            flops=flops, transcendentals=0, bytes_accessed=bytes_accessed),
    )(x_packed, cond_packed, w_cat, b_cat)
    return out_packed.reshape(N, F)


# ---------------- deterministic parameter construction ----------------
def _linear_init(key, n_in, n_out):
    """Match torch.nn.Linear default init: U(-1/sqrt(fan_in), 1/sqrt(fan_in))."""
    kw, kb = jax.random.split(key)
    bound = 1.0 / jnp.sqrt(jnp.float32(n_in))
    w = jax.random.uniform(kw, (n_out, n_in), jnp.float32, -bound, bound)
    b = jax.random.uniform(kb, (n_out,), jnp.float32, -bound, bound)
    return w, b


def build_params(key):
    kg, kb_, km, kv = jax.random.split(key, 4)
    wg, bg = _linear_init(kg, N_COND, N_FEAT)        # linear_gamma
    wb, bb = _linear_init(kb_, N_COND, N_FEAT)       # linear_beta
    running_mean = 0.1 * jax.random.normal(km, (N_FEAT,), jnp.float32)
    running_var = jax.random.uniform(kv, (N_FEAT,), jnp.float32, 0.5, 1.5)
    raw = (wg, bg, wb, bb, running_mean, running_var)

    # one-time host-side fold of eval-mode BN into the linears:
    #   out = gamma*(x*s + t) + beta = (gamma*s)*x + (gamma*t + beta)
    inv_std = 1.0 / jnp.sqrt(running_var + BN_EPS)   # s
    shift = -running_mean * inv_std                  # t
    wgT, wbT = wg.T, wb.T                            # (C, F)
    wg_f = wgT * inv_std[None, :]
    bg_f = bg * inv_std
    wb_f = wbT + wgT * shift[None, :]
    bb_f = bb + bg * shift
    folded = (wg_f, bg_f, wb_f, bb_f)

    # block-diagonal packing: 4 batch rows per lane-dense vreg row, and
    # gamma/beta concatenated along lanes -> single (4C, 256) MXU weight slab
    eye = jnp.eye(PACK, dtype=jnp.float32)
    wg_bd = jnp.einsum('pq,cf->pcqf', eye, wg_f).reshape(PACK * N_COND,
                                                         PACK * N_FEAT)
    wb_bd = jnp.einsum('pq,cf->pcqf', eye, wb_f).reshape(PACK * N_COND,
                                                         PACK * N_FEAT)
    w_cat = jnp.concatenate([wg_bd, wb_bd], axis=1).astype(jnp.bfloat16)
    b_cat = jnp.concatenate([jnp.tile(bg_f, PACK), jnp.tile(bb_f, PACK)]
                            ).reshape(1, 2 * LANES).astype(jnp.float32)
    return raw, folded, (w_cat, b_cat)


def reference_forward(x, cond, raw):
    """Pure-JAX f32 reference (PyTorch eval-mode semantics, unfolded)."""
    wg, bg, wb, bb, mean, var = raw
    x_bn = (x - mean) / jnp.sqrt(var + BN_EPS)
    gamma = cond @ wg.T + bg
    beta = cond @ wb.T + bb
    return gamma * x_bn + beta


def reference_forward_folded_bf16(x, cond, folded):
    """Reference mirroring the kernel numerics (folded BN, bf16 MXU weights)."""
    wg_f, bg_f, wb_f, bb_f = folded
    c16 = cond.astype(jnp.bfloat16)
    gamma = jnp.dot(c16, wg_f.astype(jnp.bfloat16),
                    preferred_element_type=jnp.float32) + bg_f
    beta = jnp.dot(c16, wb_f.astype(jnp.bfloat16),
                   preferred_element_type=jnp.float32) + bb_f
    return gamma * x + beta


if __name__ == "__main__":
    key = jax.random.PRNGKey(0)
    kx, kc, kp = jax.random.split(key, 3)

    N = N_STACK * BATCH     # 16 stacked module calls fused into one kernel
    x = jax.random.normal(kx, (N, N_FEAT), jnp.float32)
    cond = jax.random.normal(kc, (N, N_COND), jnp.float32)
    raw, folded, (w_cat, b_cat) = build_params(kp)

    out = conditional_batch_norm(x, cond, w_cat, b_cat)
    out = jax.block_until_ready(out)
    assert out.shape == (N, N_FEAT)

    # tight check vs a reference with identical folded / bf16-weight numerics
    ref_tight = reference_forward_folded_bf16(x, cond, folded)
    assert jnp.allclose(out, ref_tight, atol=1e-4, rtol=1e-4), \
        "mismatch vs folded/bf16 reference"

    # semantic check vs the full-f32 PyTorch-equivalent eval-mode forward
    # (looser: gamma/beta weights go through bf16 on the MXU path)
    ref = reference_forward(x, cond, raw)
    assert jnp.allclose(out, ref, atol=1e-1, rtol=5e-2), \
        "mismatch vs f32 reference"

    print("KERNEL_OK")
</pallas_src>

<mosaic_0001>
module attributes {stable_mosaic.version = 11 : i64} {
  func.func @cbn_kernel(%arg0: i32, %arg1: memref<16x128xf32, #tpu.memory_space<vmem>>, %arg2: memref<16x32xbf16, #tpu.memory_space<vmem>>, %arg3: memref<32x256xbf16, #tpu.memory_space<vmem>>, %arg4: memref<1x256xf32, #tpu.memory_space<vmem>>, %arg5: memref<16x128xf32, #tpu.memory_space<vmem>>) attributes {dimension_semantics = [#tpu.dimension_semantics<parallel>], iteration_bounds = array<i64: 4>, scalar_prefetch = 0 : i64, scratch_operands = 0 : i64, tpu.core_type = #tpu.core_type<tc>, window_params = [{transform_indices = @transform_0, window_bounds = array<i64: 16, 128>}, {transform_indices = @transform_1, window_bounds = array<i64: 16, 32>}, {pipeline_mode = #tpu.pipeline_mode<synchronous>, transform_indices = @transform_2, window_bounds = array<i64: 32, 256>}, {pipeline_mode = #tpu.pipeline_mode<synchronous>, transform_indices = @transform_3, window_bounds = array<i64: 1, 256>}, {transform_indices = @transform_4, window_bounds = array<i64: 16, 128>}]} {
    %c0 = arith.constant 0 : index
    %c0_0 = arith.constant 0 : index
    %0 = vector.load %arg2[%c0, %c0_0] : memref<16x32xbf16, #tpu.memory_space<vmem>>, vector<16x32xbf16>
    %c0_1 = arith.constant 0 : index
    %c0_2 = arith.constant 0 : index
    %1 = vector.load %arg3[%c0_1, %c0_2] : memref<32x256xbf16, #tpu.memory_space<vmem>>, vector<32x256xbf16>
    %cst = arith.constant dense<0.000000e+00> : vector<16x256xf32>
    %2 = tpu.matmul %0, %1, %cst {dimension_numbers = #tpu.dot_dimension_numbers<[1], [0], [0], [1], [0, 0, 1, 1], [], []>} : vector<16x32xbf16>, vector<32x256xbf16>, vector<16x256xf32> -> vector<16x256xf32>
    %c0_3 = arith.constant 0 : index
    %c0_4 = arith.constant 0 : index
    %3 = vector.load %arg4[%c0_3, %c0_4] : memref<1x256xf32, #tpu.memory_space<vmem>>, vector<1x256xf32>
    %4 = vector.broadcast %3 : vector<1x256xf32> to vector<16x256xf32>
    %5 = arith.addf %2, %4 : vector<16x256xf32>
    %6 = vector.extract_strided_slice %5 {offsets = [0, 0], sizes = [16, 128], strides = [1, 1]} : vector<16x256xf32> to vector<16x128xf32>
    %7 = vector.extract_strided_slice %5 {offsets = [0, 128], sizes = [16, 128], strides = [1, 1]} : vector<16x256xf32> to vector<16x128xf32>
    %c0_5 = arith.constant 0 : index
    %c0_6 = arith.constant 0 : index
    %8 = vector.load %arg1[%c0_5, %c0_6] : memref<16x128xf32, #tpu.memory_space<vmem>>, vector<16x128xf32>
    %9 = arith.mulf %6, %8 : vector<16x128xf32>
    %10 = arith.addf %9, %7 : vector<16x128xf32>
    %c0_7 = arith.constant 0 : index
    %c0_8 = arith.constant 0 : index
    %11 = vector.load %arg5[%c0_7, %c0_8] : memref<16x128xf32, #tpu.memory_space<vmem>>, vector<16x128xf32>
    tpu.vector_store %arg5[%c0_7, %c0_8], %10 {strides = array<i32>} : memref<16x128xf32, #tpu.memory_space<vmem>>, vector<16x128xf32>,
    return
  }
  func.func @transform_0(%arg0: i32) -> (i32, i32) {
    %c0_i32 = arith.constant 0 : i32
    %c0_i32_0 = arith.constant 0 : i32
    return %arg0, %c0_i32 : i32, i32
  }
  func.func @transform_1(%arg0: i32) -> (i32, i32) {
    %c0_i32 = arith.constant 0 : i32
    %c0_i32_0 = arith.constant 0 : i32
    return %arg0, %c0_i32 : i32, i32
  }
  func.func @transform_2(%arg0: i32) -> (i32, i32) {
    %c0_i32 = arith.constant 0 : i32
    %c0_i32_0 = arith.constant 0 : i32
    %c0_i32_1 = arith.constant 0 : i32
    return %c0_i32, %c0_i32_0 : i32, i32
  }
  func.func @transform_3(%arg0: i32) -> (i32, i32) {
    %c0_i32 = arith.constant 0 : i32
    %c0_i32_0 = arith.constant 0 : i32
    %c0_i32_1 = arith.constant 0 : i32
    return %c0_i32, %c0_i32_0 : i32, i32
  }
  func.func @transform_4(%arg0: i32) -> (i32, i32) {
    %c0_i32 = arith.constant 0 : i32
    %c0_i32_0 = arith.constant 0 : i32
    return %arg0, %c0_i32 : i32, i32
  }
}

</mosaic_0001>

<bundles_post_ra>
// kernel: tpu_custom_call.1
= control target key start
LH: loop header
LB: loop body
LE: loop exit
PB: predicated region body
PF: predicated region fallthrough
CT: control target
= control target key end

     0   :  { %9 = vsyncpa [#allocation3], 0  ;;  %s837_s0 = inlined_call_operand.hbm [shape: f32[64,128], index: 0, kind: input, shape index: {}]   ;;  %s838_s1 = inlined_call_operand.vmem [shape: bf16[64,32], index: 1, kind: input, shape index: {}]   ;;  %s839_s2 = inlined_call_operand.vmem [shape: bf16[32,256], index: 2, kind: input, shape index: {}]   ;;  %s840_s3 = inlined_call_operand.vmem [shape: f32[1,256], index: 3, kind: input, shape index: {}]   ;;  %s841_s4 = inlined_call_operand.hbm [shape: f32[64,128], index: 4, kind: output, shape index: {}]  }
   0x1   :  { %11 = vsyncpa [#allocation3 + $0x1], 0 }
   0x2   :  { %12 = vsyncpa [#allocation4], 0 }
   0x3   :  { %14 = vsyncpa [#allocation4 + $0x1], 0  ;;  %s650_s15 = smov 0   ;;  %s652_s16 = smov 0  }
   0x4   :  { %s654_s17 = smov 0   ;;  %s656_s18 = smov 0  }
   0x5 LB: > { %s671_s19 = sadd.s32 4294967295, %s616_s18   ;;  %s438_s20 = sadd.s32 4294967294, %s616_s18   ;;  %s616_s18 = sphi %s656_s18, %s853_s18   ;;  %s612_s17 = sphi %s654_s17, %s852_s17   ;;  %s608_s16 = sphi %s652_s16, %s851_s16   ;;  %s604_s15 = sphi %s650_s15, %s850_s15  }
   0x6   : > { %s675_s21 = sadd.s32 1, %s616_s18   ;;  %s27_s22 = sadd.s32 1, %s612_s17 }
   0x7   : > { %s24_s23 = ssub.s32 %s616_s18, %s675_s21  ;;  %p34_p0 = scmp.ne.s32.totalorder %s612_s17, %s608_s16 }
   0x8   : > { %p25_p1 = scmp.eq.s32.totalorder %s24_s23, 0  ;;  %p35_p2 = scmp.eq.s32.totalorder %s616_s18, 0 }
   0x9   : > { %p40_p3 = scmp.ne.s32.totalorder %s608_s16, %s604_s15  ;;  %p41_p4 = scmp.eq.s32.totalorder %s671_s19, 0 }
   0xa   : > { %s687_s24 = scalar_select %p25_p1, %s612_s17, %s27_s22  }
   0xb   : > { %p689_p5 = por %p35_p2, %p34_p0  ;;  %p693_p6 = por %p41_p4, %p40_p3 }
   0xc   : > { %p132_p7 = scmp.eq.s32.totalorder %s671_s19, 3  ;;  %p138_p8 = scmp.eq.s32.totalorder %s438_s20, 3 }
   0xd   : > { %p474_p9 = scmp.lt.s32.totalorder %s616_s18, 4  ;;  %s164_s29 = sand.u32 1, %s612_s17  }
   0xe   : > { %p699_p10 = por %p132_p7, %p34_p0  ;;  %p703_p11 = por %p138_p8, %p40_p3 }
   0xf   : > { %s460_s30 = sshll.u32 %s616_s18, 8  ;;  %s441_s5 = sshll.u32 %s164_s29, 4 }
  0x10   : > { %s845_s27 = scalar_select %p699_p10, 1, 0 }
  0x11   : > { %s846_s28 = scalar_select %p703_p11, 1, 0 }
  0x12   : > { %s712_s8 = scalar_lea.hbm %s837_s0, %s460_s30  ;;  %s168_s9 = scalar_lea.vmem [#allocation2], %s441_s5 }
  0x13   : > { %s175_s10 = sshll.u32 %s168_s9, 4  ;;  %p716_p12 = pnand %p474_p9, %p689_p5  ;;  %s720_s10 = int_to_ptr.vmem [resolvable:$true] %s175_s10 }
  0x14   : > { %s722_s12 = scalar_lea.sflag [#allocation3], %s164_s29  ;;  %s520_s13 = scalar_lea.hbm %s712_s8, 256 }
  0x15   : > { %p521_p13 = scmp.ne.s32.totalorder %s712_s8, %s520_s13  ;;  %p522_p0 = pneg %p716_p12 }
  0x16   : > { %s525_s22 = scalar_lea.hbm %s837_s0, 1024  ;;  %p526_p3 = scmp.lt.u32.totalorder %s712_s8, %s837_s0 }
  0x17   : > { %p523_p1 = pnand %p522_p0, %p521_p13  ;;  %p527_p4 = scmp.lt.u32.totalorder %s525_s22, %s520_s13 }
  0x18   : > { %p529_p7 = scmp.lt.u32.totalorder %s520_s13, %s712_s8 }
  0x19   : > { %p524_p2 = pneg %p523_p1  ;;  %p528_p5 = por %p527_p4, %p526_p3 }
  0x1b   : > { %p530_p8 = por %p529_p7, %p528_p5 }
  0x1d   : > { %p531_p9 = pnand %p530_p8, %p524_p2 }
  0x1f   : > { %534 = shalt.err (!%p531_p9)
}
  0x20   : > { %s535_s29 = scalar_lea.vmem %s720_s10, 256  ;;  %s618_s30 = smov [#allocation2]  }
  0x21   : > { %p536_p13 = scmp.ne.s32.totalorder %s720_s10, %s535_s29  ;;  %s540_s5 = sshll.u32 %s618_s30, 4  ;;  %s541_s5 = int_to_ptr.vmem [resolvable:$false] %s540_s5 }
  0x22   : > { %s542_s6 = scalar_lea.vmem %s541_s5, 512  ;;  %p543_p10 = scmp.lt.s32.totalorder %s720_s10, %s541_s5 }
  0x23   : > { %p538_p1 = pnand %p536_p13, %p522_p0  ;;  %p544_p3 = scmp.lt.s32.totalorder %s542_s6, %s535_s29 }
  0x25   : > { %p539_p11 = pneg %p538_p1  ;;  %p545_p4 = por %p544_p3, %p543_p10 }
  0x27   : > { %p546_p5 = pnand %p545_p4, %p539_p11 }
  0x29   : > { %549 = shalt.err (!%p546_p5)
}
  0x2a   : > { %s619_s7 = smov 128   ;;  %s620_s9 = smov 8  }
  0x2b   : > { %469 = dma.hbm_to_vmem [thread:$0]  (!%p716_p12), %s712_s8, 256, %s720_s10, %s722_s12, %s619_s7, %s619_s7, %s620_s9  }
  0x2c   : > { %p444_p0 = scmp.ge.s32.totalorder %s616_s18, 1  ;;  %p192_p2 = scmp.lt.s32.totalorder %s616_s18, 5 }
  0x2e   : > { %p193_p7 = pnand %p444_p0, %p192_p2 }
  0x2f   : > { %s753_s13 = sand.u32 (!%p193_p7), 1, %s608_s16  }
  0x30   : > { %196 = sbr.rel (%p193_p7) target bundleno = 300 (0x12c), region = 36  ;;  %s445_s14 = sshll.u32 (!%p193_p7), %s753_s13, 4 }
  0x31   : > { %s199_s20 = scalar_lea.sflag (!%p193_p7), [#allocation3], %s753_s13  ;;  %s759_s22 = scalar_lea.vmem (!%p193_p7), [#allocation2], %s445_s14 }
  0x37   : > { %595 = dma.done.wait (%p693_p6), %s199_s20, 256  }
  0x38   : > { %597 = vsyncadd (%p693_p6), %s199_s20, 4294967040  ;;  %s447_s8 = sshll.u32 %s671_s19, 1  ;;  %v621_v0 = vmov 0   ;;  %v513_v1 = vld [vmem:[%s839_s2 + $0x4] ss:$8 sps:$4 sm:$0xff]   ;;  %vm284_vm0 = vcmask 261120   ;;  %v249_v6 = vlaneseq }
  0x39   : > { %320 = vmatprep.mubr.bf16.mxu0 %v621_v0  ;;  %p234_p10 = scmp.lt.s32.totalorder %s447_s8, 7  ;;  %v515_v2 = vld [vmem:[%s839_s2] ss:$8 sps:$4 sm:$0xff]   ;;  %288 = vmatprep.subr.bf16.mxu0 %v513_v1  ;;  %v516_v3 = vld [vmem:[%s839_s2 + $0x14] ss:$8 sps:$4 sm:$0xff]   ;;  %s461_s12 = sshll.u32 %s671_s19, 8 }
  0x3a   : > { %289 = vmatpush1.bf16.msra.mxu0 %v515_v2  ;;  %v518_v4 = vld [vmem:[%s839_s2 + $0x10] ss:$8 sps:$4 sm:$0xff]   ;;  %v250_v7 = vshrl.u32 %v249_v6, 7  ;;  %v247_v9 = vld [vmem:[%s840_s3] sm:$0x3]  ;;  %p848_p11 = scmp.ne.s32.totalorder %s845_s27, 0 }
  0x3b   : > { %s855_s8 = smov (!%p234_p10, %s447_s8), 7  ;;  %290 = vmatprep.subr.bf16.mxu0 %v516_v3  ;;  %v331_v14 = vld [vmem:[%s759_s22] sm:$0xff]  ;;  %v332_v19 = vld [vmem:[%s759_s22 + $0x8] sm:$0xff]  ;;  %s340_s22 = scalar_lea.sflag [#allocation4], %s753_s13 }
  0x3c   : > { %s448_s10 = sshll.u32 %s855_s8, 2  ;;  %v251_v8 = vsub.s32 0, %v250_v7  ;;  %v255_v10 = vsub.s32 1, %v250_v7  ;;  %s622_s19 = smov [#allocation5]  }
  0x3d   : > { %s237_s26 = scalar_lea.vmem %s838_s1, %s448_s10  ;;  %s231_s10 = scalar_lea.vmem [#allocation5], %s445_s14 }
  0x3e   : > { %v519_v5 = vld [vmem:[%s237_s26] sm:$0xff]   ;;  %291 = vmatpush1.bf16.msra.mxu0 %v518_v4  ;;  %v252_v11 = vrot.slane %v247_v9, %v251_v8  ;;  %v256_v12 = vrot.slane %v247_v9, %v255_v10  ;;  %s353_s11 = sshll.u32 %s231_s10, 4  ;;  %s794_s14 = scalar_lea.hbm %s841_s4, %s461_s12  ;;  %s789_s11 = int_to_ptr.vmem [resolvable:$true] %s353_s11 }
  0x3f   : > { %s550_s29 = scalar_lea.vmem %s789_s11, 256  ;;  %s554_s30 = sshll.u32 %s622_s19, 4  ;;  %s555_s30 = int_to_ptr.vmem [resolvable:$false] %s554_s30 }
  0x40   : > { %p551_p6 = scmp.ne.s32.totalorder %s789_s11, %s550_s29  ;;  %s556_s26 = scalar_lea.vmem %s555_s30, 512 }
  0x41   : > { %454 = vmatmul.mubr.msk.bf16.vlgmr.msra.gmra.mrb[0].mxu0 %vm284_vm0, %v519_v5  ;;  %p557_p9 = scmp.lt.s32.totalorder %s789_s11, %s555_s30  ;;  %p558_p13 = scmp.lt.s32.totalorder %s556_s26, %s550_s29 }
  0x42   : > { %p552_p12 = pnand %p551_p6, %p848_p11 }
  0x43   : > { %p559_p1 = por %p558_p13, %p557_p9 }
  0x44   : > { %p553_p8 = pneg %p552_p12 }
  0x46   : > { %p560_p3 = pnand %p559_p1, %p553_p8 }
 0x114   : > { %v322_v13 = vpop.f32.mrb[0].mxu0 }
 0x115   : > { %v323_v15 = vadd.f32 %v322_v13, %v252_v11  ;;  %v324_v16 = vpop.f32.mrb[1].mxu0 }
 0x116   : > { %v325_v17 = vadd.f32 %v324_v16, %v256_v12  ;;  %v326_v18 = vpop.f32.mrb[2].mxu0 }
 0x117   : > { %v333_v20 = vmul.f32 %v331_v14, %v323_v15  ;;  %v327_v21 = vadd.f32 %v326_v18, %v252_v11  ;;  %v328_v22 = vpop.f32.mrb[3].mxu0 }
 0x118   : > { %v329_v23 = vadd.f32 %v328_v22, %v256_v12 }
 0x119   : > { %v335_v24 = vadd.f32 %v333_v20, %v325_v17  ;;  %v334_v25 = vmul.f32 %v332_v19, %v327_v21 }
 0x11b   : > { %337 = vst [vmem:[%s231_s10] sm:$0xff] %v335_v24  ;;  %v336_v26 = vadd.f32 %v334_v25, %v329_v23 }
 0x11d   : > { %338 = vst [vmem:[%s231_s10 + $0x8] sm:$0xff] %v336_v26 }
 0x11e   : > { %563 = shalt.err (!%p560_p3)
}
 0x11f   : > { %s564_s5 = scalar_lea.hbm %s794_s14, 256  ;;  %s568_s9 = scalar_lea.hbm %s841_s4, 1024 }
 0x120   : > { %p565_p4 = scmp.ne.s32.totalorder %s794_s14, %s564_s5  ;;  %p569_p2 = scmp.lt.u32.totalorder %s794_s14, %s841_s4 }
 0x121   : > { %p570_p7 = scmp.lt.u32.totalorder %s568_s9, %s564_s5  ;;  %p572_p6 = scmp.lt.u32.totalorder %s564_s5, %s794_s14 }
 0x122   : > { %p566_p5 = pnand %p565_p4, %p848_p11 }
 0x123   : > { %p571_p10 = por %p570_p7, %p569_p2 }
 0x124   : > { %p567_p0 = pneg %p566_p5 }
 0x125   : > { %p573_p12 = por %p572_p6, %p571_p10 }
 0x127   : > { %p574_p8 = pnand %p573_p12, %p567_p0 }
 0x129   : > { %577 = shalt.err (!%p574_p8)
}
 0x12a   : > { %s623_s10 = smov 128   ;;  %s624_s12 = smov 8  }
 0x12b   : > { %464 = dma.vmem_to_hbm [thread:$0]  (%p848_p11), %s789_s11, 256, %s794_s14, %s340_s22, %s623_s10, %s623_s10, %s624_s12  }
 0x12c PF: > { %p475_p9 = scmp.ge.s32.totalorder %s616_s18, 2  ;;  %s368_s23 = sand.u32 1, %s604_s15  }
 0x12d   : > { %p849_p13 = scmp.ne.s32.totalorder %s846_s28, 0  ;;  %s369_s25 = scalar_lea.sflag [#allocation4], %s368_s23 }
 0x12f   : > { %p471_p1 = pnand %p475_p9, %p849_p13 }
 0x131   : > { %599 = dma.done.wait (!%p471_p1), %s369_s25, 256  }
 0x132   : > { %601 = vsyncadd (!%p471_p1), %s369_s25, 4294967040  ;;  %p17_p3 = scmp.ge.s32.totalorder %s675_s21, 6   ;;  %s850_s15 = smov %s608_s16 }
 0x133   : > { %s851_s16 = smov %s612_s17  ;;  %s852_s17 = smov %s687_s24 }
 0x134   : > { %s853_s18 = smov %s675_s21  ;;  %19 = sbr.rel (!%p17_p3) target bundleno = 5 (0x5), region = 84 }
 0x13b   :  { %374 = vsyncpa [#allocation3], 1 }
 0x13c   :  { %376 = vsyncpa [#allocation3 + $0x1], 1 }
 0x13d   :  { %377 = vsyncpa [#allocation4], 1 }
 0x13e   :  { %379 = vsyncpa [#allocation4 + $0x1], 1 }

</bundles_post_ra>
